<compile_context>
chip_gen: v7x
topology: tpu7x:2x2x1
jax: 0.10.0
libtpu: 0.0.40
codegen_flags: <defaults>
</compile_context>

<pallas_src>
import functools
import math

import numpy as np

import jax
import jax.numpy as jnp
from jax.experimental import pallas as pl
from jax.experimental.pallas import tpu as pltpu


def _round_up(x: int, m: int) -> int:
    return -(-x // m) * m


def _bilinear_matrix_np(out_size: int, in_size: int) -> np.ndarray:
    """Interpolation matrix M [out_size, in_size] with out = M @ in, matching
    PyTorch F.interpolate(mode='bilinear', align_corners=False) on one axis."""
    out_idx = np.arange(out_size, dtype=np.float64)
    scale = in_size / out_size
    src = (out_idx + 0.5) * scale - 0.5
    src = np.maximum(src, 0.0)                       # PyTorch clamps negative coords to 0
    i0 = np.minimum(np.floor(src).astype(np.int64), in_size - 1)
    frac = src - i0
    i1 = np.minimum(i0 + 1, in_size - 1)             # border: weight folds back onto i0
    m = np.zeros((out_size, in_size), dtype=np.float64)
    rows = np.arange(out_size)
    np.add.at(m, (rows, i0), 1.0 - frac)
    np.add.at(m, (rows, i1), frac)
    return m


# ---------------------------------------------------------------------------
# Kernels
# ---------------------------------------------------------------------------

def _fused_resize_kernel(m_ref, w2d_ref, o_ref, *, threshold):
    # m_ref  : VMEM [Kt, Hm*Wm]    f32  (block of mask logits, flattened)
    # w2d_ref: VMEM [Hm*Wm, Tpx]   bf16 (column tile of kron(ry, rx).T)
    # o_ref  : VMEM [Kt, Tpx]      u8   (lane-dense flattened binary masks)
    p = jax.nn.sigmoid(m_ref[...].astype(jnp.float32)).astype(jnp.bfloat16)  # VPU/EUP
    r = jnp.dot(p, w2d_ref[...], preferred_element_type=jnp.float32)         # bf16 MXU, f32 acc
    o_ref[...] = (r > threshold).astype(jnp.uint8)


def _separable_resize_kernel(m_ref, rxt_ref, ry_ref, o_ref, t_ref, *, threshold, hm):
    # m_ref  : VMEM [Kt*Hm, Wm]      f32
    # rxt_ref: VMEM [Wm, Wt_pad]     bf16
    # ry_ref : VMEM [Ht, Hm]         bf16
    # o_ref  : VMEM [Kt, Ht, Wt_pad] u8   (Wt padded to lane multiple -> dense stores)
    # t_ref  : VMEM [Kt*Hm, Wt_pad]  bf16 scratch (row-resized intermediate)
    kt = o_ref.shape[0]
    s = jax.nn.sigmoid(m_ref[...].astype(jnp.float32)).astype(jnp.bfloat16)
    # one batched matmul across the whole block for the width contraction
    t_ref[...] = jnp.dot(s, rxt_ref[...],
                         preferred_element_type=jnp.float32).astype(jnp.bfloat16)
    ry = ry_ref[...]

    def body(n, carry):
        tn = t_ref[pl.ds(n * hm, hm), :]                                   # [Hm, Wt_pad]
        r = jnp.dot(ry, tn, preferred_element_type=jnp.float32)            # [Ht, Wt_pad]
        o_ref[n] = (r > threshold).astype(jnp.uint8)
        return carry

    jax.lax.fori_loop(0, kt, body, 0, unroll=True)


# ---------------------------------------------------------------------------
# Cached per-shape builders + wrappers
# ---------------------------------------------------------------------------

@functools.lru_cache(maxsize=None)
def _build_resize_fn(n, hm, wm, img_h, img_w, threshold, force_separable, fused_budget):
    """Returns a jitted fn: [n, hm, wm] f32 logits -> [n, img_h, img_w] uint8."""
    ry_np = _bilinear_matrix_np(img_h, hm)     # [Ht, Hm]
    rx_np = _bilinear_matrix_np(img_w, wm)     # [Wt, Wm]
    total_px = img_h * img_w

    use_fused = (not force_separable) and \
        (hm * wm * _round_up(total_px, 128) * 2 <= fused_budget)

    if use_fused:
        # Mask-block axis: fill the MXU M dimension (up to 128), multiple of 32
        # for the uint8 store path.
        block_k = min(128, _round_up(n, 32))
        # Output-pixel axis tiling: bounds the resident W2D slice per step and
        # lets its DMA pipeline against the previous tile's matmul.
        tile_cap = max(128, ((4 << 20) // (hm * wm * 2)) // 128 * 128)
        tile_px = min(_round_up(total_px, 128), 2048, tile_cap)
        px_pad = _round_up(total_px, tile_px)
        n_pad = _round_up(n, block_k)
        # Guarantee >= 2 grid steps when affordable (v7x megacore sharding).
        if (n_pad // block_k) * (px_pad // tile_px) < 2 and block_k >= 64:
            block_k //= 2
            n_pad = _round_up(n, block_k)

        w2d_np = np.kron(ry_np, rx_np).T                      # [Hm*Wm, Ht*Wt]
        if px_pad != total_px:
            w2d_np = np.pad(w2d_np, ((0, 0), (0, px_pad - total_px)))
        w2d_np = np.ascontiguousarray(w2d_np, dtype=np.float32)

        kernel = functools.partial(_fused_resize_kernel, threshold=float(threshold))

        def fn(mask_logits):
            m = mask_logits
            if n_pad != n:
                m = jnp.pad(m, ((0, n_pad - n), (0, 0), (0, 0)))   # pad rows sliced off below
            m2d = m.reshape(n_pad, hm * wm)
            w2d = jnp.asarray(w2d_np).astype(jnp.bfloat16)          # baked constant under jit
            out = pl.pallas_call(
                kernel,
                out_shape=jax.ShapeDtypeStruct((n_pad, px_pad), jnp.uint8),
                grid_spec=pltpu.PrefetchScalarGridSpec(
                    num_scalar_prefetch=0,
                    grid=(n_pad // block_k, px_pad // tile_px),
                    in_specs=[
                        pl.BlockSpec((block_k, hm * wm), lambda j, p: (j, 0)),
                        pl.BlockSpec((hm * wm, tile_px), lambda j, p: (0, p)),
                    ],
                    out_specs=pl.BlockSpec((block_k, tile_px), lambda j, p: (j, p)),
                ),
                compiler_params=pltpu.CompilerParams(
                    dimension_semantics=("parallel", "parallel"),
                    vmem_limit_bytes=32 * 1024 * 1024),
            )(m2d, w2d)
            return out[:n, :total_px].reshape(n, img_h, img_w)

        return jax.jit(fn)

    # ---- Separable fallback (large outputs) ----
    wt_pad = _round_up(img_w, 128)                 # lane-dense second matmul + stores
    per_mask = (img_h * wt_pad * 4                 # f32 [Ht, Wt_pad] result in flight
                + hm * wt_pad * 2                  # bf16 scratch slice
                + 2 * img_h * wt_pad               # double-buffered u8 output
                + 2 * hm * wm * 4)                 # double-buffered f32 input
    block_k = int(max(1, min(8, (12 << 20) // max(per_mask, 1))))
    # keep the flattened (Kt*Hm, Wm) input block sublane-aligned
    block_k = _round_up(block_k, 8 // math.gcd(hm, 8))
    n_pad = _round_up(n, block_k)

    rxt_np = np.ascontiguousarray(rx_np.T)          # [Wm, Wt]
    if wt_pad != img_w:
        rxt_np = np.pad(rxt_np, ((0, 0), (0, wt_pad - img_w)))
    rxt_np = rxt_np.astype(np.float32)
    ry_np32 = ry_np.astype(np.float32)

    kernel = functools.partial(_separable_resize_kernel,
                               threshold=float(threshold), hm=hm)

    def fn(mask_logits):
        m = mask_logits
        if n_pad != n:
            m = jnp.pad(m, ((0, n_pad - n), (0, 0), (0, 0)))
        m2d = m.reshape(n_pad * hm, wm)
        rxt = jnp.asarray(rxt_np).astype(jnp.bfloat16)
        ry = jnp.asarray(ry_np32).astype(jnp.bfloat16)
        out = pl.pallas_call(
            kernel,
            out_shape=jax.ShapeDtypeStruct((n_pad, img_h, wt_pad), jnp.uint8),
            grid_spec=pltpu.PrefetchScalarGridSpec(
                num_scalar_prefetch=0,
                grid=(n_pad // block_k,),
                in_specs=[
                    pl.BlockSpec((block_k * hm, wm), lambda j: (j, 0)),
                    pl.BlockSpec((wm, wt_pad), lambda j: (0, 0)),
                    pl.BlockSpec((img_h, hm), lambda j: (0, 0)),
                ],
                out_specs=pl.BlockSpec((block_k, img_h, wt_pad), lambda j: (j, 0, 0)),
                scratch_shapes=[pltpu.VMEM((block_k * hm, wt_pad), jnp.bfloat16)],
            ),
            compiler_params=pltpu.CompilerParams(
                dimension_semantics=("parallel",),
                vmem_limit_bytes=64 * 1024 * 1024),
        )(m2d, rxt, ry)
        return out[:n, :, :img_w]

    return jax.jit(fn)


def resize_threshold_masks(mask_logits, img_h, img_w, threshold, *,
                           force_separable=False, fused_w2d_budget_bytes=16 << 20):
    """sigmoid -> bilinear resize (align_corners=False) -> (> threshold) as uint8.

    mask_logits: [N, Hm, Wm] float (pre-sigmoid).  Returns uint8 [N, img_h, img_w].
    """
    n, hm, wm = (int(s) for s in mask_logits.shape)
    img_h, img_w = int(img_h), int(img_w)
    if n == 0:
        return jnp.zeros((0, img_h, img_w), dtype=jnp.uint8)
    fn = _build_resize_fn(n, hm, wm, img_h, img_w, float(threshold),
                          bool(force_separable), int(fused_w2d_budget_bytes))
    return fn(mask_logits)


def post_process_segm(outputs, target_sizes, threshold=0.5, num_top_queries=100,
                      force_separable=False):
    """JAX/Pallas equivalent of PostProcessSegm.forward.

    outputs: dict with 'pred_logits' [B, Q, C] and 'pred_masks' [B, Q, Hm, Wm].
    target_sizes: numpy int array [B, 2] with (img_h, img_w) per image
                  (concrete host ints, mirroring PyTorch's .item()).
    Returns a list of dicts with 'masks' (uint8 [K, img_h, img_w]),
    'scores' (float32 [K]) and 'labels' (int32 [K]).
    """
    out_logits = outputs["pred_logits"]
    assert "pred_masks" in outputs, "Masks not found in model outputs"
    out_masks = outputs["pred_masks"]
    assert out_logits.shape[0] == target_sizes.shape[0]
    assert target_sizes.shape[1] == 2

    B, Q, C = out_logits.shape
    _, _, Hm, Wm = out_masks.shape
    K = num_top_queries

    # glue (no clean Pallas top-k): sigmoid + top-k over the flattened (Q*C) scores.
    prob = jax.nn.sigmoid(out_logits).reshape(B, Q * C)
    scores, topk_indexes = jax.lax.top_k(prob, K)
    topk_boxes = (topk_indexes // C).astype(jnp.int32)
    labels = (topk_indexes % C).astype(jnp.int32)

    # Batch images with identical target sizes into one resize call (one
    # dispatch + one deeper grid instead of per-image kernels).
    groups = {}
    for i in range(B):
        hw = (int(target_sizes[i, 0]), int(target_sizes[i, 1]))
        groups.setdefault(hw, []).append(i)

    masks_per_image = [None] * B
    for (h, w), idxs in groups.items():
        g = len(idxs)
        gather = jnp.asarray(idxs, dtype=jnp.int32)
        if Q <= K:
            # Fewer unique masks than selections (top-k indices repeat): resize
            # every query mask once, then gather the K rows on the uint8 output.
            stacked = jnp.take(out_masks, gather, axis=0).reshape(g * Q, Hm, Wm)
            resized = resize_threshold_masks(stacked, h, w, threshold,
                                             force_separable=force_separable)
            resized = resized.reshape(g, Q, h, w)
            for gi, i in enumerate(idxs):
                masks_per_image[i] = jnp.take(resized[gi], topk_boxes[i], axis=0)
        else:
            # Cheap low-res gather in XLA, then one dense resize pass over K masks.
            selected = jnp.stack(
                [jnp.take(out_masks[i], topk_boxes[i], axis=0) for i in idxs], axis=0)
            resized = resize_threshold_masks(selected.reshape(g * K, Hm, Wm), h, w,
                                             threshold, force_separable=force_separable)
            resized = resized.reshape(g, K, h, w)
            for gi, i in enumerate(idxs):
                masks_per_image[i] = resized[gi]

    return [{"masks": masks_per_image[i], "scores": scores[i], "labels": labels[i]}
            for i in range(B)]


def _reference_resize_np(mask_logits_np, img_h, img_w):
    """Host float64 reference of sigmoid -> bilinear resize (pre-threshold)."""
    _, hm, wm = mask_logits_np.shape
    ry = _bilinear_matrix_np(img_h, hm)
    rx = _bilinear_matrix_np(img_w, wm)
    s = 1.0 / (1.0 + np.exp(-mask_logits_np.astype(np.float64)))
    return np.einsum("yh,nhw,xw->nyx", ry, s, rx)


if __name__ == "__main__":
    key = jax.random.PRNGKey(0)
    k_logits, k_masks = jax.random.split(key)

    # Small shapes consistent with the module: B=2, Q=32 queries, C=4 classes,
    # 8x8 low-res predicted masks, k=100 top queries (needs Q*C >= 100 -> 128).
    B, Q, C = 2, 32, 4
    Hm = Wm = 8
    pred_logits = jax.random.normal(k_logits, (B, Q, C), dtype=jnp.float32)
    pred_masks = jax.random.normal(k_masks, (B, Q, Hm, Wm), dtype=jnp.float32)
    target_sizes = np.array([[16, 16], [24, 16]], dtype=np.int32)

    outputs = {"pred_logits": pred_logits, "pred_masks": pred_masks}
    results = post_process_segm(outputs, target_sizes, threshold=0.5, num_top_queries=100)
    for r in results:
        jax.block_until_ready(r["masks"])
        jax.block_until_ready(r["scores"])
        jax.block_until_ready(r["labels"])

    # shape / dtype sanity
    assert results[0]["masks"].shape == (100, 16, 16)
    assert results[1]["masks"].shape == (100, 24, 16)
    assert results[0]["masks"].dtype == jnp.uint8

    # Numerical check against a float64 host reference of the same math.
    # Pixels landing within 2e-2 of the 0.5 threshold are skipped (the kernel
    # feeds the MXU bf16 operands with f32 accumulation; PyTorch uses fp16).
    prob = jax.nn.sigmoid(pred_logits).reshape(B, Q * C)
    _, topk_idx = jax.lax.top_k(prob, 100)
    boxes_np = np.asarray((topk_idx // C).astype(jnp.int32))
    masks_np = np.asarray(pred_masks, dtype=np.float64)
    for i in range(B):
        h, w = int(target_sizes[i, 0]), int(target_sizes[i, 1])
        ref_vals = _reference_resize_np(masks_np[i], h, w)[boxes_np[i]]
        ref_bin = (ref_vals > 0.5).astype(np.uint8)
        got = np.asarray(results[i]["masks"])
        safe = np.abs(ref_vals - 0.5) > 2e-2
        assert np.array_equal(got[safe], ref_bin[safe]), f"kernel mismatch on image {i}"

    # also exercise the guarded separable (large-output) code path on small shapes
    sep = np.asarray(
        resize_threshold_masks(pred_masks[0], 24, 16, 0.5, force_separable=True))
    ref_vals = _reference_resize_np(masks_np[0], 24, 16)
    ref_bin = (ref_vals > 0.5).astype(np.uint8)
    safe = np.abs(ref_vals - 0.5) > 2e-2
    assert np.array_equal(sep[safe], ref_bin[safe]), "separable path mismatch"

    print("KERNEL_OK")
</pallas_src>

<mosaic_0001>
module attributes {stable_mosaic.version = 11 : i64} {
  func.func @_fused_resize_kernel(%arg0: i32, %arg1: i32, %arg2: memref<32x64xf32, #tpu.memory_space<vmem>>, %arg3: memref<64x256xbf16, #tpu.memory_space<vmem>>, %arg4: memref<32x256xi8, #tpu.memory_space<vmem>>) attributes {dimension_semantics = [#tpu.dimension_semantics<parallel>, #tpu.dimension_semantics<parallel>], iteration_bounds = array<i64: 1, 1>, scalar_prefetch = 0 : i64, scratch_operands = 0 : i64, tpu.core_type = #tpu.core_type<tc>, window_params = [{transform_indices = @transform_0, window_bounds = array<i64: 32, 64>}, {transform_indices = @transform_1, window_bounds = array<i64: 64, 256>}, {transform_indices = @transform_2, window_bounds = array<i64: 32, 256>}]} {
    %c0 = arith.constant 0 : index
    %c0_0 = arith.constant 0 : index
    %0 = vector.load %arg2[%c0, %c0_0] : memref<32x64xf32, #tpu.memory_space<vmem>>, vector<32x64xf32>
    %1 = arith.negf %0 : vector<32x64xf32>
    %2 = math.exp %1 : vector<32x64xf32>
    %cst = arith.constant 1.000000e+00 : f32
    %3 = vector.broadcast %cst : f32 to vector<32x64xf32>
    %4 = arith.addf %3, %2 : vector<32x64xf32>
    %5 = arith.divf %3, %4 : vector<32x64xf32>
    %6 = arith.truncf %5 : vector<32x64xf32> to vector<32x64xbf16>
    %c0_1 = arith.constant 0 : index
    %c0_2 = arith.constant 0 : index
    %7 = vector.load %arg3[%c0_1, %c0_2] : memref<64x256xbf16, #tpu.memory_space<vmem>>, vector<64x256xbf16>
    %cst_3 = arith.constant dense<0.000000e+00> : vector<32x256xf32>
    %8 = tpu.matmul %6, %7, %cst_3 {dimension_numbers = #tpu.dot_dimension_numbers<[1], [0], [0], [1], [0, 0, 1, 1], [], []>} : vector<32x64xbf16>, vector<64x256xbf16>, vector<32x256xf32> -> vector<32x256xf32>
    %cst_4 = arith.constant 5.000000e-01 : f32
    %9 = vector.broadcast %cst_4 : f32 to vector<32x256xf32>
    %10 = arith.cmpf ogt, %8, %9 : vector<32x256xf32>
    %11 = arith.extui %10 : vector<32x256xi1> to vector<32x256xi8>
    %c0_5 = arith.constant 0 : index
    %c0_6 = arith.constant 0 : index
    %12 = vector.load %arg4[%c0_5, %c0_6] : memref<32x256xi8, #tpu.memory_space<vmem>>, vector<32x256xi8>
    tpu.vector_store %arg4[%c0_5, %c0_6], %11 {strides = array<i32>} : memref<32x256xi8, #tpu.memory_space<vmem>>, vector<32x256xi8>,
    return
  }
  func.func @transform_0(%arg0: i32, %arg1: i32) -> (i32, i32) {
    %c0_i32 = arith.constant 0 : i32
    %c0_i32_0 = arith.constant 0 : i32
    return %arg0, %c0_i32 : i32, i32
  }
  func.func @transform_1(%arg0: i32, %arg1: i32) -> (i32, i32) {
    %c0_i32 = arith.constant 0 : i32
    %c0_i32_0 = arith.constant 0 : i32
    return %c0_i32, %arg1 : i32, i32
  }
  func.func @transform_2(%arg0: i32, %arg1: i32) -> (i32, i32) {
    %c0_i32 = arith.constant 0 : i32
    return %arg0, %arg1 : i32, i32
  }
}

</mosaic_0001>

<bundles_post_ra>
// kernel: fn.1
= control target key start
LH: loop header
LB: loop body
LE: loop exit
PB: predicated region body
PF: predicated region fallthrough
CT: control target
= control target key end

     0   :  { %v243_v1 = vmov 0   ;;  %vm92_vm0 = vcmask 523264   ;;  %s311_s1 = inlined_call_operand.vmem [shape: bf16[64,256], index: 1, kind: input, shape index: {}]   ;;  %s312_s0 = inlined_call_operand.vmem [shape: f32[32,64], index: 0, kind: input, shape index: {}]   ;;  %s313_s2 = inlined_call_operand.vmem [shape: u8[32,256], index: 2, kind: output, shape index: {}]  }
   0x1   :  { %v215_v0 = vld [vmem:[%s311_s1 + $0x4] ss:$8 sps:$4 sm:$0xff]   ;;  %131 = vmatprep.mubr.bf16.mxu0 %v243_v1  ;;  %141 = vmatprep.mubr.bf16.mxu1 %v243_v1  ;;  %v217_v2 = vld [vmem:[%s311_s1] ss:$8 sps:$4 sm:$0xff]   ;;  %v218_v3 = vld [vmem:[%s311_s1 + $0x14] ss:$8 sps:$4 sm:$0xff]  }
   0x2   :  { %99 = vmatprep.subr.bf16.mxu0 %v215_v0  ;;  %206 = vmatprep.subr.bf16.mxu1 %v215_v0  ;;  %v220_v4 = vld [vmem:[%s311_s1 + $0x10] ss:$8 sps:$4 sm:$0xff]   ;;  %v221_v5 = vld [vmem:[%s311_s1 + $0x24] ss:$8 sps:$4 sm:$0xff]   ;;  %v223_v12 = vld [vmem:[%s311_s1 + $0x20] ss:$8 sps:$4 sm:$0xff]  }
   0x3   :  { %100 = vmatpush1.bf16.msra.mxu0 %v217_v2  ;;  %210 = vmatpush1.bf16.msra.mxu1 %v217_v2  ;;  %v14_v6 = vld [vmem:[%s312_s0] sm:$0xff]  ;;  %v15_v7 = vld [vmem:[%s312_s0 + $0x8] sm:$0xff]  ;;  %v16_v10 = vld [vmem:[%s312_s0 + $0x10] sm:$0xff] }
   0x4   :  { %101 = vmatprep.subr.bf16.mxu0 %v218_v3  ;;  %207 = vmatprep.subr.bf16.mxu1 %v218_v3  ;;  %v192_v8 = vmul.f32 -1.442695, %v14_v6  ;;  %v193_v9 = vmul.f32 -1.442695, %v15_v7  ;;  %v17_v11 = vld [vmem:[%s312_s0 + $0x18] sm:$0xff] }
   0x5   :  { %v194_v13 = vmul.f32 -1.442695, %v16_v10  ;;  %v195_v14 = vmul.f32 -1.442695, %v17_v11  ;;  %v224_v15 = vld [vmem:[%s311_s1 + $0x34] ss:$8 sps:$4 sm:$0xff]  }
   0x6   :  { %227 = vpow2.f32 %v192_v8  ;;  %v226_v16 = vld [vmem:[%s311_s1 + $0x30] ss:$8 sps:$4 sm:$0xff]  }
   0x7   :  { %102 = vmatpush1.bf16.msra.mxu0 %v220_v4  ;;  %211 = vmatpush1.bf16.msra.mxu1 %v220_v4  ;;  %229 = vpow2.f32 %v193_v9 }
   0x8   :  { %103 = vmatprep.subr.bf16.mxu0 %v221_v5  ;;  %208 = vmatprep.subr.bf16.mxu1 %v221_v5  ;;  %231 = vpow2.f32 %v194_v13 }
   0x9   :  { %233 = vpow2.f32 %v195_v14 }
   0xb   :  { %104 = vmatpush1.bf16.msra.mxu0 %v223_v12  ;;  %212 = vmatpush1.bf16.msra.mxu1 %v223_v12 }
   0xc   :  { %105 = vmatprep.subr.bf16.mxu0 %v224_v15  ;;  %209 = vmatprep.subr.bf16.mxu1 %v224_v15 }
   0xf   :  { %106 = vmatpush1.bf16.msra.mxu0 %v226_v16  ;;  %213 = vmatpush1.bf16.msra.mxu1 %v226_v16 }
  0x10   :  { %v228_v17 = vpop.eup %227 }
  0x11   :  { %v230_v18 = vpop.eup %229  ;;  %v30_v19 = vadd.f32 1.0, %v228_v17 }
  0x12   :  { %v232_v20 = vpop.eup %231  ;;  %v31_v21 = vadd.f32 1.0, %v230_v18 }
  0x13   :  { %v234_v22 = vpop.eup %233  ;;  %235 = vrcp.f32 %v30_v19  ;;  %v32_v23 = vadd.f32 1.0, %v232_v20 }
  0x14   :  { %237 = vrcp.f32 %v31_v21  ;;  %v33_v24 = vadd.f32 1.0, %v234_v22 }
  0x15   :  { %239 = vrcp.f32 %v32_v23 }
  0x16   :  { %241 = vrcp.f32 %v33_v24 }
  0x1d   :  { %v236_v25 = vpop.eup %235 }
  0x1e   :  { %v238_v26 = vpop.eup %237 }
  0x1f   :  { %v240_v27 = vpop.eup %239  ;;  %v42_v28 = vpack.c.bf16 %v238_v26, %v236_v25 }
  0x20   :  { %v242_v29 = vpop.eup %241 }
  0x21   :  { %204 = vmatmul.mubr.msk.bf16.vlgmr.msra.gmra.mrb[0].mxu0 %vm92_vm0, %v42_v28  ;;  %v43_v30 = vpack.c.bf16 %v242_v29, %v240_v27 }
  0x23   :  { %205 = vmatmul.mubr.msk.bf16.vlgmr.msra.gmra.mrb[0].mxu1 %vm92_vm0, %v43_v30 }
  0xf4   :  { %v133_v31 = vpop.f32.mrb[0].mxu0 }
  0xf5   :  { %v135_v32 = vpop.f32.mrb[1].mxu0  ;;  %vm152_vm1 = vcmp.gt.f32.partialorder %v133_v31, 0.5 }
  0xf6   :  { %v143_v33 = vpop.f32.mrb[0].mxu1  ;;  %v137_v34 = vpop.f32.mrb[2].mxu0  ;;  %vm153_vm3 = vcmp.gt.f32.partialorder %v135_v32, 0.5 }
  0xf7   :  { %v145_v35 = vpop.f32.mrb[1].mxu1  ;;  %vm154_vm2 = vcmp.gt.f32.partialorder %v137_v34, 0.5  ;;  %v139_v36 = vpop.f32.mrb[3].mxu0  ;;  %vm156_vm6 = vcmp.gt.f32.partialorder %v143_v33, 0.5 }
  0xf8   :  { %vm160_vm4 = vmpackc.low %vm154_vm2, %vm152_vm1  ;;  %v147_v37 = vpop.f32.mrb[2].mxu1  ;;  %vm155_vm5 = vcmp.gt.f32.partialorder %v139_v36, 0.5  ;;  %vm157_vm11 = vcmp.gt.f32.partialorder %v145_v35, 0.5 }
  0xf9   :  { %vm158_vm7 = vcmp.gt.f32.partialorder %v147_v37, 0.5  ;;  %vm163_vm8 = vmpackc.low %vm155_vm5, %vm153_vm3  ;;  %v149_v38 = vpop.f32.mrb[3].mxu1 }
  0xfa   :  { %vm161_vm9 = vmpackc.low %vm158_vm7, %vm156_vm6  ;;  %vm159_vm10 = vcmp.gt.f32.partialorder %v149_v38, 0.5 }
  0xfb   :  { %vm162_vm12 = vmpackc.even %vm161_vm9, %vm160_vm4 }
  0xfc   :  { %v166_v39 = vsel %vm162_vm12, 16843009, %v243_v1  ;;  %vm164_vm13 = vmpackc.low %vm159_vm10, %vm157_vm11 }
  0xfd   :  { %v168_v40 = vunpack.c.0.s8 %v166_v39  ;;  %v170_v41 = vunpack.c.1.s8 %v166_v39  ;;  %v172_v42 = vunpack.c.2.s8 %v166_v39  ;;  %v174_v43 = vunpack.c.3.s8 %v166_v39  ;;  %vm165_vm14 = vmpackc.even %vm164_vm13, %vm163_vm8 }
  0xfe   :  { %v167_v44 = vsel %vm165_vm14, 16843009, %v243_v1 }
  0xff   :  { %v169_v45 = vunpack.c.0.s8 %v167_v44  ;;  %v171_v46 = vunpack.c.1.s8 %v167_v44  ;;  %v173_v47 = vunpack.c.2.s8 %v167_v44  ;;  %v175_v48 = vunpack.c.3.s8 %v167_v44 }
 0x101   :  { %v176_v49 = vpack.c.b16 %v169_v45, %v168_v40  ;;  %v178_v50 = vpack.c.b16 %v171_v46, %v170_v41  ;;  %v180_v51 = vpack.c.b16 %v173_v47, %v172_v42  ;;  %v182_v52 = vpack.c.b16 %v175_v48, %v174_v43 }
 0x103   :  { %v177_v53 = vpack.c.b8 %v176_v49, %v176_v49  ;;  %v179_v54 = vpack.c.b8 %v178_v50, %v178_v50  ;;  %v181_v55 = vpack.c.b8 %v180_v51, %v180_v51  ;;  %v183_v56 = vpack.c.b8 %v182_v52, %v182_v52 }
 0x105   :  { %184 = vst [vmem:[%s313_s2] sm:$0xf] %v177_v53  ;;  %185 = vst [vmem:[%s313_s2 + $0x4] sm:$0xf] %v179_v54 }
 0x106   :  { %186 = vst [vmem:[%s313_s2 + $0x8] sm:$0xf] %v181_v55  ;;  %187 = vst [vmem:[%s313_s2 + $0xc] sm:$0xf] %v183_v56 }

</bundles_post_ra>
